<compile_context>
chip_gen: v6e
topology: v6e:2x2x1
jax: 0.10.0
libtpu: 0.0.40
codegen_flags: <defaults>
</compile_context>

<pallas_src>
import numpy as np
import jax
import jax.numpy as jnp
from jax.experimental import pallas as pl
from jax.experimental.pallas import tpu as pltpu

LOG_2PI = float(np.log(2.0 * np.pi))


def _nll_typ_kernel(z_ref, s_ref, prior_ref, gsq_ref, acc_prior, acc_gsq):
    """Accumulate sublane-folded partial sums of z^2 and (dz/dx * z)^2.

    z_ref:     (B, S, 128)    current feature block of z
    s_ref:     (S, 128)       element-wise dz/dx for this block (batch-invariant)
    prior_ref: (B, SUB, 128)  output: partial sums of z^2 per sample (this partition)
    gsq_ref:   (SUB, 128)     output: partial sums of (dz/dx * z)^2 (this partition)
    acc_prior: (B, SUB, 128)  VMEM f32 accumulator
    acc_gsq:   (SUB, 128)     VMEM f32 accumulator
    """
    f = pl.program_id(1)

    @pl.when(f == 0)
    def _():
        acc_prior[...] = jnp.zeros_like(acc_prior)
        acc_gsq[...] = jnp.zeros_like(acc_gsq)

    z = z_ref[...].astype(jnp.float32)
    s = s_ref[...].astype(jnp.float32)

    B, S, L = z.shape
    SUB = acc_prior.shape[1]
    G = S // SUB

    zsq = z * z                                        # reused by both terms
    # Fold the S sublanes into SUB-sublane accumulators.  The reshape stays on
    # (8, 128) vreg-tile boundaries, so this lowers to pure vreg-to-vreg VPU
    # adds — no XLU reduce and no full-block scratch read-modify-write.
    acc_prior[...] += zsq.reshape(B, G, SUB, L).sum(axis=1)
    gpart = (s * s) * zsq.sum(axis=0)                  # (S, 128) batch collapse
    acc_gsq[...] += gpart.reshape(G, SUB, L).sum(axis=0)

    @pl.when(f == pl.num_programs(1) - 1)
    def _():
        # Lane/sublane-dense writeback, once per partition; the final tiny
        # reductions run in the scalar glue outside the kernel.
        prior_ref[...] = acc_prior[...]
        gsq_ref[...] = acc_gsq[...]


def _tpu_info():
    """(vmem_capacity_bytes, num_tensorcores) with conservative fallbacks."""
    try:
        vmem_cap = int(pltpu.get_tpu_info().vmem_capacity_bytes)
    except Exception:
        vmem_cap = 64 << 20
    try:
        kind = jax.devices()[0].device_kind.lower()
    except Exception:
        kind = ""
    num_tc = 2 if "v7" in kind else 1          # v7x: 2 TensorCores per chip
    return vmem_cap, num_tc


def _pick_block_sublanes(R, B, itemsize, block_budget, min_steps=4,
                         prefer_even_steps=False):
    """Largest legal S: divides R, (S % 8 == 0 or S == R), block <= budget.

    Prefers keeping >= min_steps grid steps along the feature axis so the
    pipeline double-buffer overlaps; on 2-core chips additionally prefers an
    even step count so the partition split stays usable.
    """
    max_s = max(1, block_budget // (max(B, 1) * 128 * itemsize))
    cands = [s for s in range(1, R + 1)
             if R % s == 0 and s <= max_s and (s % 8 == 0 or s == R)]
    if not cands:
        # Budget smaller than the minimal legal block — take the smallest
        # legal one instead of emitting an (8,128)-illegal block shape.
        cands = [8] if (R % 8 == 0 and R >= 8) else [R]

    def pref(s):
        steps = R // s
        return (steps >= min_steps,
                (steps % 2 == 0) if prefer_even_steps else True,
                s)

    return max(cands, key=pref)


def nll_typicality_loss(x, z, sldj, dz_dx, k=256, alpha=1.0):
    """Forward pass of NLL_Typicality_Loss.

    x:     (B, C, H, W)   flow input (shape only; grad taken analytically)
    z:     (B, C, H, W)   flow output
    sldj:  (B,)           sum log |det J| per sample
    dz_dx: (C, H, W)      element-wise jacobian dz/dx (same for every sample)
    """
    B = z.shape[0]
    D = int(np.prod(z.shape[1:]))      # matches torch: prod(z.size()[1:])
    D3 = int(np.prod(z.shape[-3:]))    # matches torch: prod(z.shape[-3:])

    # Zero-pad the feature axis to a lane multiple (exact for both terms:
    # padded zeros contribute nothing to sum z^2 or sum (s*z)^2).
    Dp = ((D + 127) // 128) * 128
    z_flat = z.reshape(B, D)
    s_flat = dz_dx.reshape(D)
    if Dp != D:
        z_flat = jnp.pad(z_flat, ((0, 0), (0, Dp - D)))
        s_flat = jnp.pad(s_flat, (0, Dp - D))
    R = Dp // 128
    z3 = z_flat.reshape(B, R, 128)     # native dtype in, f32 accum in-kernel
    s3 = s_flat.reshape(R, 128)
    itemsize = z3.dtype.itemsize

    vmem_cap, num_tc = _tpu_info()
    if num_tc == 2 or vmem_cap <= (64 << 20):      # v7x-class: 64 MiB / TC
        block_budget, vmem_target = 6 << 20, 48 << 20
    else:                                          # v5e / v6e: 128 MiB physical
        block_budget, vmem_target = 12 << 20, 96 << 20

    S = _pick_block_sublanes(R, B, itemsize, block_budget,
                             min_steps=4 * num_tc,
                             prefer_even_steps=(num_tc == 2))
    SUB = 8 if S % 8 == 0 else S
    F_total = R // S
    # 2-way partition split only where it maps to a second TensorCore.
    P = 2 if (num_tc == 2 and F_total >= 2 and F_total % 2 == 0) else 1
    Fpp = F_total // P

    # v7x with a short per-core trip count: deepen the z pipeline to hide the
    # exposed DMA turnaround (modest VMEM cost, accounted for below).
    nbuf = 3 if (num_tc == 2 and 1 < Fpp <= 4) else 2
    z_spec_kwargs = {"pipeline_mode": pl.Buffered(3)} if nbuf == 3 else {}
    z_spec = pl.BlockSpec((B, S, 128), lambda p, f: (0, p * Fpp + f, 0),
                          **z_spec_kwargs)
    s_spec = pl.BlockSpec((S, 128), lambda p, f: (p * Fpp + f, 0))

    block_bytes = B * S * 128 * itemsize
    needed = (nbuf * block_bytes                      # z multi-buffer
              + 2 * S * 128 * itemsize                # s double-buffer
              + (B + 1) * SUB * 128 * 4               # accumulator scratch
              + 2 * (B + 1) * SUB * 128 * 4           # resident output blocks
              + (2 << 20))                            # headroom
    vmem_limit = int(min(max(needed, 32 << 20), vmem_target))

    prior_parts, gsq_parts = pl.pallas_call(
        _nll_typ_kernel,
        out_shape=(
            jax.ShapeDtypeStruct((P, B, SUB, 128), jnp.float32),
            jax.ShapeDtypeStruct((P, SUB, 128), jnp.float32),
        ),
        grid_spec=pltpu.PrefetchScalarGridSpec(
            num_scalar_prefetch=0,
            grid=(P, Fpp),
            in_specs=[z_spec, s_spec],
            out_specs=[
                pl.BlockSpec((None, B, SUB, 128), lambda p, f: (p, 0, 0, 0)),
                pl.BlockSpec((None, SUB, 128), lambda p, f: (p, 0, 0)),
            ],
            scratch_shapes=[
                pltpu.VMEM((B, SUB, 128), jnp.float32),
                pltpu.VMEM((SUB, 128), jnp.float32),
            ],
        ),
        compiler_params=pltpu.CompilerParams(
            dimension_semantics=("parallel", "arbitrary"),
            vmem_limit_bytes=vmem_limit,
        ),
    )(z3, s3)

    # ----- scalar glue (matches the PyTorch forward exactly) -----
    prior_sum = -0.5 * jnp.sum(prior_parts, axis=(0, 2, 3))       # (B,) -0.5*sum z^2
    gsq = jnp.sum(gsq_parts)                                      # sum (dz/dx * z)^2
    prior_ll = prior_sum - 0.5 * LOG_2PI * D - np.log(k) * D
    ll = prior_ll + sldj.astype(jnp.float32)
    nll = -jnp.mean(ll)
    bpd = nll * np.log2(np.e) / D3
    mean_bpd = bpd                                                # bpd already scalar
    gradient_norm = jnp.sqrt(gsq) / B                             # ||dz_dx * z / B||_2
    return mean_bpd + alpha * gradient_norm


def _reference(x, scale, k, alpha):
    """Pure-JAX reference (jax.grad through the same synthetic flow)."""
    B, C, H, W = x.shape
    D3 = C * H * W

    def nll_fn(xx):
        zz = xx * scale.reshape(1, C, 1, 1)
        sldj = jnp.full((B,), H * W * jnp.sum(jnp.log(jnp.abs(scale))))
        prior_ll = -0.5 * (zz ** 2 + LOG_2PI)
        prior_ll = prior_ll.reshape(B, -1).sum(-1) - np.log(k) * D3
        return -(prior_ll + sldj).mean()

    nll, g = jax.value_and_grad(nll_fn)(x)
    bpd = nll * np.log2(np.e) / D3
    gradient_norm = jnp.sqrt(jnp.sum(g ** 2))
    return bpd + alpha * gradient_norm


if __name__ == "__main__":
    B, C, H, W = 2, 4, 16, 16
    k, alpha = 256, 1.0

    key = jax.random.PRNGKey(0)
    x = jax.random.normal(key, (B, C, H, W), dtype=jnp.float32)

    # Deterministic synthetic affine flow parameters.
    scale = 0.5 + 0.1 * jnp.arange(C, dtype=jnp.float32)          # per-channel
    z = x * scale.reshape(1, C, 1, 1)
    sldj = jnp.full((B,), H * W * jnp.sum(jnp.log(jnp.abs(scale))),
                    dtype=jnp.float32)
    dz_dx = jnp.broadcast_to(scale.reshape(C, 1, 1), (C, H, W))

    loss = nll_typicality_loss(x, z, sldj, dz_dx, k=k, alpha=alpha)
    loss = jax.block_until_ready(loss)

    ref = jax.block_until_ready(_reference(x, scale, k, alpha))
    np.testing.assert_allclose(np.asarray(loss), np.asarray(ref),
                               rtol=1e-4, atol=1e-4)
    print("KERNEL_OK")
</pallas_src>

<mosaic_0001>
module attributes {stable_mosaic.version = 11 : i64} {
  func.func @_nll_typ_kernel(%arg0: i32, %arg1: i32, %arg2: memref<2x8x128xf32, #tpu.memory_space<vmem>>, %arg3: memref<8x128xf32, #tpu.memory_space<vmem>>, %arg4: memref<1x2x8x128xf32, #tpu.memory_space<vmem>>, %arg5: memref<1x8x128xf32, #tpu.memory_space<vmem>>, %arg6: memref<2x8x128xf32, #tpu.memory_space<vmem>>, %arg7: memref<8x128xf32, #tpu.memory_space<vmem>>) attributes {dimension_semantics = [#tpu.dimension_semantics<parallel>, #tpu.dimension_semantics<arbitrary>], iteration_bounds = array<i64: 1, 1>, scalar_prefetch = 0 : i64, scratch_operands = 2 : i64, tpu.core_type = #tpu.core_type<tc>, window_params = [{transform_indices = @transform_0, window_bounds = array<i64: 2, 8, 128>}, {transform_indices = @transform_1, window_bounds = array<i64: 8, 128>}, {transform_indices = @transform_2, window_bounds = array<i64: 1, 2, 8, 128>}, {transform_indices = @transform_3, window_bounds = array<i64: 1, 8, 128>}]} {
    %c0_i32 = arith.constant 0 : i32
    %0 = arith.cmpi eq, %arg1, %c0_i32 : i32
    %1 = arith.extui %0 : i1 to i32
    %c0_i32_0 = arith.constant 0 : i32
    %2 = arith.cmpi ne, %1, %c0_i32_0 : i32
    scf.if %2 {
      %cst_19 = arith.constant 0.000000e+00 : f32
      %22 = vector.broadcast %cst_19 : f32 to vector<2x8x128xf32>
      %c0_20 = arith.constant 0 : index
      %c0_21 = arith.constant 0 : index
      %c0_22 = arith.constant 0 : index
      %23 = vector.load %arg6[%c0_20, %c0_21, %c0_22] : memref<2x8x128xf32, #tpu.memory_space<vmem>>, vector<2x8x128xf32>
      tpu.vector_store %arg6[%c0_20, %c0_21, %c0_22], %22 {strides = array<i32>} : memref<2x8x128xf32, #tpu.memory_space<vmem>>, vector<2x8x128xf32>,
      %cst_23 = arith.constant 0.000000e+00 : f32
      %24 = vector.broadcast %cst_23 : f32 to vector<8x128xf32>
      %c0_24 = arith.constant 0 : index
      %c0_25 = arith.constant 0 : index
      %25 = vector.load %arg7[%c0_24, %c0_25] : memref<8x128xf32, #tpu.memory_space<vmem>>, vector<8x128xf32>
      tpu.vector_store %arg7[%c0_24, %c0_25], %24 {strides = array<i32>} : memref<8x128xf32, #tpu.memory_space<vmem>>, vector<8x128xf32>,
    } else {
    }
    %c0 = arith.constant 0 : index
    %c0_1 = arith.constant 0 : index
    %c0_2 = arith.constant 0 : index
    %3 = vector.load %arg2[%c0, %c0_1, %c0_2] : memref<2x8x128xf32, #tpu.memory_space<vmem>>, vector<2x8x128xf32>
    %c0_3 = arith.constant 0 : index
    %c0_4 = arith.constant 0 : index
    %4 = vector.load %arg3[%c0_3, %c0_4] : memref<8x128xf32, #tpu.memory_space<vmem>>, vector<8x128xf32>
    %5 = arith.mulf %3, %3 : vector<2x8x128xf32>
    %c0_5 = arith.constant 0 : index
    %c0_6 = arith.constant 0 : index
    %c0_7 = arith.constant 0 : index
    %6 = vector.load %arg6[%c0_5, %c0_6, %c0_7] : memref<2x8x128xf32, #tpu.memory_space<vmem>>, vector<2x8x128xf32>
    %7 = vector.shape_cast %5 : vector<2x8x128xf32> to vector<2x1x8x128xf32>
    %cst = arith.constant dense<0.000000e+00> : vector<2x8x128xf32>
    %8 = vector.multi_reduction <add>, %7, %cst [1] : vector<2x1x8x128xf32> to vector<2x8x128xf32>
    %9 = arith.addf %6, %8 : vector<2x8x128xf32>
    %c0_8 = arith.constant 0 : index
    %c0_9 = arith.constant 0 : index
    %c0_10 = arith.constant 0 : index
    %10 = vector.load %arg6[%c0_8, %c0_9, %c0_10] : memref<2x8x128xf32, #tpu.memory_space<vmem>>, vector<2x8x128xf32>
    tpu.vector_store %arg6[%c0_8, %c0_9, %c0_10], %9 {strides = array<i32>} : memref<2x8x128xf32, #tpu.memory_space<vmem>>, vector<2x8x128xf32>,
    %11 = arith.mulf %4, %4 : vector<8x128xf32>
    %cst_11 = arith.constant dense<0.000000e+00> : vector<8x128xf32>
    %12 = vector.multi_reduction <add>, %5, %cst_11 [0] : vector<2x8x128xf32> to vector<8x128xf32>
    %13 = arith.mulf %11, %12 : vector<8x128xf32>
    %c0_12 = arith.constant 0 : index
    %c0_13 = arith.constant 0 : index
    %14 = vector.load %arg7[%c0_12, %c0_13] : memref<8x128xf32, #tpu.memory_space<vmem>>, vector<8x128xf32>
    %15 = vector.shape_cast %13 : vector<8x128xf32> to vector<1x8x128xf32>
    %cst_14 = arith.constant dense<0.000000e+00> : vector<8x128xf32>
    %16 = vector.multi_reduction <add>, %15, %cst_14 [0] : vector<1x8x128xf32> to vector<8x128xf32>
    %17 = arith.addf %14, %16 : vector<8x128xf32>
    %c0_15 = arith.constant 0 : index
    %c0_16 = arith.constant 0 : index
    %18 = vector.load %arg7[%c0_15, %c0_16] : memref<8x128xf32, #tpu.memory_space<vmem>>, vector<8x128xf32>
    tpu.vector_store %arg7[%c0_15, %c0_16], %17 {strides = array<i32>} : memref<8x128xf32, #tpu.memory_space<vmem>>, vector<8x128xf32>,
    %c0_i32_17 = arith.constant 0 : i32
    %19 = arith.cmpi eq, %arg1, %c0_i32_17 : i32
    %20 = arith.extui %19 : i1 to i32
    %c0_i32_18 = arith.constant 0 : i32
    %21 = arith.cmpi ne, %20, %c0_i32_18 : i32
    scf.if %21 {
      %c0_19 = arith.constant 0 : index
      %c0_20 = arith.constant 0 : index
      %c0_21 = arith.constant 0 : index
      %22 = vector.load %arg6[%c0_19, %c0_20, %c0_21] : memref<2x8x128xf32, #tpu.memory_space<vmem>>, vector<2x8x128xf32>
      %c0_22 = arith.constant 0 : index
      %c0_23 = arith.constant 0 : index
      %c0_24 = arith.constant 0 : index
      %c0_25 = arith.constant 0 : index
      %23 = vector.load %arg4[%c0_22, %c0_23, %c0_24, %c0_25] : memref<1x2x8x128xf32, #tpu.memory_space<vmem>>, vector<1x2x8x128xf32>
      %24 = vector.shape_cast %23 : vector<1x2x8x128xf32> to vector<2x8x128xf32>
      %25 = vector.shape_cast %22 : vector<2x8x128xf32> to vector<1x2x8x128xf32>
      tpu.vector_store %arg4[%c0_22, %c0_23, %c0_24, %c0_25], %25 {strides = array<i32>} : memref<1x2x8x128xf32, #tpu.memory_space<vmem>>, vector<1x2x8x128xf32>,
      %c0_26 = arith.constant 0 : index
      %c0_27 = arith.constant 0 : index
      %26 = vector.load %arg7[%c0_26, %c0_27] : memref<8x128xf32, #tpu.memory_space<vmem>>, vector<8x128xf32>
      %c0_28 = arith.constant 0 : index
      %c0_29 = arith.constant 0 : index
      %c0_30 = arith.constant 0 : index
      %27 = vector.load %arg5[%c0_28, %c0_29, %c0_30] : memref<1x8x128xf32, #tpu.memory_space<vmem>>, vector<1x8x128xf32>
      %28 = vector.shape_cast %27 : vector<1x8x128xf32> to vector<8x128xf32>
      %29 = vector.shape_cast %26 : vector<8x128xf32> to vector<1x8x128xf32>
      tpu.vector_store %arg5[%c0_28, %c0_29, %c0_30], %29 {strides = array<i32>} : memref<1x8x128xf32, #tpu.memory_space<vmem>>, vector<1x8x128xf32>,
    } else {
    }
    return
  }
  func.func @transform_0(%arg0: i32, %arg1: i32) -> (i32, i32, i32) {
    %c1_i32 = arith.constant 1 : i32
    %0 = arith.muli %arg0, %c1_i32 : i32
    %1 = arith.addi %0, %arg1 : i32
    %c0_i32 = arith.constant 0 : i32
    %c0_i32_0 = arith.constant 0 : i32
    %c0_i32_1 = arith.constant 0 : i32
    return %c0_i32, %1, %c0_i32_0 : i32, i32, i32
  }
  func.func @transform_1(%arg0: i32, %arg1: i32) -> (i32, i32) {
    %c1_i32 = arith.constant 1 : i32
    %0 = arith.muli %arg0, %c1_i32 : i32
    %1 = arith.addi %0, %arg1 : i32
    %c0_i32 = arith.constant 0 : i32
    %c0_i32_0 = arith.constant 0 : i32
    return %1, %c0_i32 : i32, i32
  }
  func.func @transform_2(%arg0: i32, %arg1: i32) -> (i32, i32, i32, i32) {
    %c0_i32 = arith.constant 0 : i32
    %c0_i32_0 = arith.constant 0 : i32
    %c0_i32_1 = arith.constant 0 : i32
    %c0_i32_2 = arith.constant 0 : i32
    return %arg0, %c0_i32, %c0_i32_0, %c0_i32_1 : i32, i32, i32, i32
  }
  func.func @transform_3(%arg0: i32, %arg1: i32) -> (i32, i32, i32) {
    %c0_i32 = arith.constant 0 : i32
    %c0_i32_0 = arith.constant 0 : i32
    %c0_i32_1 = arith.constant 0 : i32
    return %arg0, %c0_i32, %c0_i32_0 : i32, i32, i32
  }
}

</mosaic_0001>

<bundles_post_ra>
// kernel: tpu_custom_call.1
= control target key start
LH: loop header
LB: loop body
LE: loop exit
PB: predicated region body
PF: predicated region fallthrough
CT: control target
= control target key end

     0   :  { %9 = vsyncpa [#allocation5], 0  ;;  %s255_s0 = inlined_call_operand.hbm [shape: f32[2,8,128], index: 0, kind: input, shape index: {}]   ;;  %s256_s1 = inlined_call_operand.hbm [shape: f32[8,128], index: 1, kind: input, shape index: {}]   ;;  %s257_s2 = inlined_call_operand.hbm [shape: f32[1,2,8,128], index: 2, kind: output, shape index: {0}]   ;;  %s258_s3 = inlined_call_operand.hbm [shape: f32[1,8,128], index: 3, kind: output, shape index: {1}]  }
   0x1   :  { %10 = vsyncpa [#allocation8], 0 }
   0x2   :  { %11 = vsyncpa [#allocation6], 0 }
   0x3   :  { %12 = vsyncpa [#allocation11], 0  ;;  %s211_s12 = smov [#allocation4]  }
   0x4   :  { %s21_s13 = sshll.u32 %s211_s12, 4  ;;  %s22_s13 = int_to_ptr.vmem [resolvable:$true] %s21_s13 }
   0x5   :  { %s131_s14 = scalar_lea.vmem %s22_s13, 256  ;;  %p136_p1 = scmp.lt.s32.totalorder %s22_s13, %s22_s13 }
   0x6   :  { %p132_p0 = scmp.ne.s32.totalorder %s22_s13, %s131_s14  ;;  %p137_p2 = scmp.lt.s32.totalorder %s131_s14, %s131_s14 }
   0x8   :  { %p138_p3 = por %p137_p2, %p136_p1 }
   0xa   :  { %p139_p4 = pnand %p138_p3, %p132_p0 }
   0xc   :  { %142 = shalt.err (!%p139_p4)
}
   0xd   :  { %s212_s15 = smov 128   ;;  %s213_s16 = smov 8  }
   0xe   :  { %27 = dma.hbm_to_vmem [thread:$0]  %s255_s0, 256, %s22_s13, [#allocation5], %s212_s15, %s212_s15, %s213_s16  }
   0xf   :  { %s214_s19 = smov [#allocation7]  }
  0x10   :  { %s37_s20 = sshll.u32 %s214_s19, 4  ;;  %s38_s20 = int_to_ptr.vmem [resolvable:$true] %s37_s20 }
  0x11   :  { %s151_s21 = scalar_lea.vmem %s38_s20, 128  ;;  %p156_p6 = scmp.lt.s32.totalorder %s38_s20, %s38_s20 }
  0x12   :  { %p152_p5 = scmp.ne.s32.totalorder %s38_s20, %s151_s21  ;;  %p157_p7 = scmp.lt.s32.totalorder %s151_s21, %s151_s21 }
  0x14   :  { %p158_p8 = por %p157_p7, %p156_p6 }
  0x16   :  { %p159_p9 = pnand %p158_p8, %p152_p5 }
  0x18   :  { %162 = shalt.err (!%p159_p9)
}
  0x19   :  { %40 = dma.hbm_to_vmem [thread:$0]  %s256_s1, 128, %s38_s20, [#allocation8]  }
  0x1a   :  { %203 = dma.done.wait [#allocation5], 256  }
  0x1b   :  { %204 = vsyncadd [#allocation5], 4294967040 }
  0x1c   :  { %205 = dma.done.wait [#allocation8], 128  }
  0x1d   :  { %206 = vsyncadd [#allocation8], 4294967168  ;;  %s215_s24 = smov [#allocation9]   ;;  %v56_v0 = vld [vmem:[#allocation4] sm:$0xff]  ;;  %v57_v1 = vld [vmem:[#allocation4 + $0x8] sm:$0xff]  ;;  %s216_s25 = smov [#allocation10]  }
  0x1e   :  { %s90_s0 = sshll.u32 %s215_s24, 4  ;;  %v58_v2 = vld [vmem:[#allocation7] sm:$0xff]  ;;  %v59_v3 = vmul.f32 %v56_v0, %v56_v0  ;;  %v60_v4 = vmul.f32 %v57_v1, %v57_v1  ;;  %s103_s26 = sshll.u32 %s216_s25, 4  ;;  %s91_s0 = int_to_ptr.vmem [resolvable:$true] %s90_s0  ;;  %s104_s26 = int_to_ptr.vmem [resolvable:$true] %s103_s26 }
  0x1f   :  { %v69_v5 = vmul.f32 %v58_v2, %v58_v2  ;;  %s163_s27 = scalar_lea.vmem %s91_s0, 256  ;;  %p168_p11 = scmp.lt.s32.totalorder %s91_s0, %s91_s0 }
  0x20   :  { %81 = vst [vmem:[#allocation9] sm:$0xff] %v59_v3  ;;  %82 = vst [vmem:[#allocation9 + $0x8] sm:$0xff] %v60_v4  ;;  %v70_v6 = vadd.f32 %v60_v4, %v59_v3  ;;  %p164_p10 = scmp.ne.s32.totalorder %s91_s0, %s163_s27  ;;  %p169_p12 = scmp.lt.s32.totalorder %s163_s27, %s163_s27 }
  0x22   :  { %p170_p13 = por %p169_p12, %p168_p11 }
  0x24   :  { %p171_p0 = pnand %p170_p13, %p164_p10 }
  0x26   :  { %174 = shalt.err (!%p171_p0)
}
  0x27   :  { %96 = dma.vmem_to_hbm [thread:$0]  %s91_s0, 256, %s257_s2, [#allocation6], %s212_s15, %s212_s15, %s213_s16   ;;  %v71_v7 = vmul.f32 %v70_v6, %v69_v5 }
  0x28   :  { %s183_s29 = scalar_lea.vmem %s104_s26, 128  ;;  %p188_p2 = scmp.lt.s32.totalorder %s104_s26, %s104_s26 }
  0x29   :  { %84 = vst [vmem:[#allocation10] sm:$0xff] %v71_v7  ;;  %p184_p1 = scmp.ne.s32.totalorder %s104_s26, %s183_s29  ;;  %p189_p3 = scmp.lt.s32.totalorder %s183_s29, %s183_s29 }
  0x2b   :  { %p190_p4 = por %p189_p3, %p188_p2 }
  0x2d   :  { %p191_p5 = pnand %p190_p4, %p184_p1 }
  0x2f   :  { %194 = shalt.err (!%p191_p5)
}
  0x30   :  { %106 = dma.vmem_to_hbm [thread:$0]  %s104_s26, 128, %s258_s3, [#allocation11]  }
  0x31   :  { %207 = dma.done.wait [#allocation6], 256  }
  0x32   :  { %208 = vsyncadd [#allocation6], 4294967040 }
  0x33   :  { %209 = dma.done.wait [#allocation11], 128  }
  0x34   :  { %210 = vsyncadd [#allocation11], 4294967168 }
  0x35   :  { %113 = vsyncpa [#allocation5], 1 }
  0x36   :  { %114 = vsyncpa [#allocation8], 1 }
  0x37   :  { %115 = vsyncpa [#allocation6], 1 }
  0x38   :  { %116 = vsyncpa [#allocation11], 1 }

</bundles_post_ra>
